<compile_context>
chip_gen: v7x
topology: tpu7x:2x2x1
jax: 0.10.0
libtpu: 0.0.40
codegen_flags: <defaults>
</compile_context>

<pallas_src>
import functools

import jax
import jax.numpy as jnp
from jax.experimental import pallas as pl
from jax.experimental.pallas import tpu as pltpu


def _round_up(x, m):
    return (x + m - 1) // m * m


def _mlp_kernel(x_ref,
                w1_ref, b1_ref,
                w2_ref, b2_ref,
                w3_ref, b3_ref,
                w4_ref, b4_ref,
                o_ref):
    def layer(h, w_ref, b_ref, relu):
        # Cast the activation to the weight dtype (bf16 when packed as bf16)
        # so the MXU runs in its native precision; accumulate + bias/ReLU f32.
        y = jnp.dot(h.astype(w_ref.dtype), w_ref[...],
                    preferred_element_type=jnp.float32) + b_ref[...]
        return jnp.maximum(y, 0.0) if relu else y

    h = layer(x_ref[...], w1_ref, b1_ref, True)   # 256 -> 128 (64 real + 64 zero)
    h = layer(h, w2_ref, b2_ref, True)            # 128 -> 128
    h = layer(h, w3_ref, b3_ref, True)            # 128 -> 256
    out = layer(h, w4_ref, b4_ref, False)         # 256 -> 128 (2 real + 126 zero)
    # Store only the real output lanes (masked vst; trivial next to the matmuls).
    o_ref[...] = out[:, :o_ref.shape[1]].astype(o_ref.dtype)


def pack_params(params, *, compute_dtype=jnp.float32):
    """Zero-pad every hidden/output feature dim up to a multiple of 128
    (lane-dense for MXU/VPU) and optionally cast weights to bf16.

    Padding is mathematically a no-op: padded weight columns / biases are zero,
    ReLU(0) = 0, and padded weight rows of the next layer are zero.
    Call once outside the hot path. Returns (packed_params, true_out_dim)."""
    dims = [params[0][0].shape[0]] + [w.shape[1] for (w, _) in params]
    pdims = [dims[0]] + [_round_up(max(d, 128), 128) for d in dims[1:]]
    packed = []
    for i, (w, b) in enumerate(params):
        pin, pout = pdims[i], pdims[i + 1]
        wp = jnp.zeros((pin, pout), compute_dtype).at[
            :w.shape[0], :w.shape[1]].set(w.astype(compute_dtype))
        bp = jnp.zeros((1, pout), jnp.float32).at[
            :, :b.shape[1]].set(b.astype(jnp.float32))
        packed.append((wp, bp))
    return packed, dims[-1]


def share_encoder_pos_forward(x, packed_params, *, d_out, block_n=1024):
    """Fused MLP forward. x: (N, input_dim) float32. Returns (N, d_out) f32."""
    n, d_in = x.shape

    # --- Row tiling -------------------------------------------------------
    block_n = max(8, (int(block_n) // 8) * 8)
    block_n_eff = min(block_n, _round_up(n, 8))
    if block_n_eff > n:
        # A single block exactly covering the array is always legal.
        block_n_eff = n
    # Ensure >= 2 grid steps for moderate batches so the "parallel" axis can
    # shard across both TensorCores on v7x (no effect on v5e/v6e).
    if n > 256 and pl.cdiv(n, block_n_eff) < 2:
        block_n_eff = min(block_n_eff, _round_up(pl.cdiv(n, 2), 256))
    grid = (pl.cdiv(n, block_n_eff),)   # ragged last block masked by Pallas

    def weight_spec(shape):
        # Constant block index -> DMA'd once, stays VMEM-resident across steps.
        return pl.BlockSpec(shape, lambda i: (0, 0))

    flat_params = []
    in_specs = [pl.BlockSpec((block_n_eff, d_in), lambda i: (i, 0))]
    for w, b in packed_params:
        flat_params += [w, b]
        in_specs += [weight_spec(w.shape), weight_spec(b.shape)]

    return pl.pallas_call(
        _mlp_kernel,
        out_shape=jax.ShapeDtypeStruct((n, d_out), jnp.float32),
        grid_spec=pltpu.PrefetchScalarGridSpec(
            num_scalar_prefetch=0,
            grid=grid,
            in_specs=in_specs,
            out_specs=pl.BlockSpec((block_n_eff, d_out), lambda i: (i, 0)),
        ),
        compiler_params=pltpu.CompilerParams(
            dimension_semantics=("parallel",)),
    )(x, *flat_params)


def init_params(key, input_dim=256, output_dim=2):
    """Deterministic init mimicking PyTorch nn.Linear default
    (uniform +/- 1/sqrt(fan_in)); weights stored already transposed."""
    dims = [(input_dim, 64), (64, 128), (128, 256), (256, output_dim)]
    params = []
    for (fan_in, fan_out) in dims:
        key, kw, kb = jax.random.split(key, 3)
        bound = 1.0 / jnp.sqrt(float(fan_in))
        w = jax.random.uniform(kw, (fan_in, fan_out), jnp.float32, -bound, bound)
        b = jax.random.uniform(kb, (1, fan_out), jnp.float32, -bound, bound)
        params.append((w, b))
    return params


def reference_forward(x, params, compute_dtype=jnp.float32):
    h = x
    for i, (w, b) in enumerate(params):
        h = jnp.dot(h.astype(compute_dtype), w.astype(compute_dtype),
                    preferred_element_type=jnp.float32) + b.astype(jnp.float32)
        if i < len(params) - 1:
            h = jnp.maximum(h, 0.0)
    return h


if __name__ == "__main__":
    key = jax.random.PRNGKey(0)
    k_params, k_x1, k_x2 = jax.random.split(key, 3)

    input_dim, output_dim = 256, 2
    params = init_params(k_params, input_dim=input_dim, output_dim=output_dim)

    # --- f32 path --------------------------------------------------------
    packed_f32, d_out = pack_params(params, compute_dtype=jnp.float32)
    fwd = jax.jit(functools.partial(
        share_encoder_pos_forward, d_out=d_out, block_n=1024))

    x_small = jax.random.normal(k_x1, (16, input_dim), jnp.float32)
    out = jax.block_until_ready(fwd(x_small, packed_f32))
    ref = reference_forward(x_small, params)
    assert out.shape == (16, output_dim), out.shape
    assert jnp.allclose(out, ref, atol=1e-4, rtol=1e-4), "f32 mismatch (small batch)"

    # Ragged batch: exercises the partial last block (no wrapper-side padding)
    # and the >=2-grid-step split for v7x's two TensorCores.
    x_ragged = jax.random.normal(k_x2, (300, input_dim), jnp.float32)
    out_r = jax.block_until_ready(fwd(x_ragged, packed_f32))
    ref_r = reference_forward(x_ragged, params)
    assert out_r.shape == (300, output_dim), out_r.shape
    assert jnp.allclose(out_r, ref_r, atol=1e-4, rtol=1e-4), "f32 mismatch (ragged batch)"

    # --- bf16 weights / MXU-native path (f32 accumulation, f32 bias/ReLU) --
    packed_bf16, _ = pack_params(params, compute_dtype=jnp.bfloat16)
    out_b = jax.block_until_ready(fwd(x_ragged, packed_bf16))
    ref_b = reference_forward(x_ragged, params, compute_dtype=jnp.bfloat16)
    assert jnp.allclose(out_b, ref_b, atol=5e-2, rtol=5e-2), "bf16 mismatch"

    print("KERNEL_OK")
</pallas_src>

<mosaic_0001>
module attributes {stable_mosaic.version = 11 : i64} {
  func.func @_mlp_kernel(%arg0: i32, %arg1: memref<16x256xf32, #tpu.memory_space<vmem>>, %arg2: memref<256x128xf32, #tpu.memory_space<vmem>>, %arg3: memref<1x128xf32, #tpu.memory_space<vmem>>, %arg4: memref<128x128xf32, #tpu.memory_space<vmem>>, %arg5: memref<1x128xf32, #tpu.memory_space<vmem>>, %arg6: memref<128x256xf32, #tpu.memory_space<vmem>>, %arg7: memref<1x256xf32, #tpu.memory_space<vmem>>, %arg8: memref<256x128xf32, #tpu.memory_space<vmem>>, %arg9: memref<1x128xf32, #tpu.memory_space<vmem>>, %arg10: memref<16x2xf32, #tpu.memory_space<vmem>>) attributes {dimension_semantics = [#tpu.dimension_semantics<parallel>], iteration_bounds = array<i64: 1>, scalar_prefetch = 0 : i64, scratch_operands = 0 : i64, tpu.core_type = #tpu.core_type<tc>, window_params = [{transform_indices = @transform_0, window_bounds = array<i64: 16, 256>}, {pipeline_mode = #tpu.pipeline_mode<synchronous>, transform_indices = @transform_1, window_bounds = array<i64: 256, 128>}, {pipeline_mode = #tpu.pipeline_mode<synchronous>, transform_indices = @transform_2, window_bounds = array<i64: 1, 128>}, {pipeline_mode = #tpu.pipeline_mode<synchronous>, transform_indices = @transform_3, window_bounds = array<i64: 128, 128>}, {pipeline_mode = #tpu.pipeline_mode<synchronous>, transform_indices = @transform_4, window_bounds = array<i64: 1, 128>}, {pipeline_mode = #tpu.pipeline_mode<synchronous>, transform_indices = @transform_5, window_bounds = array<i64: 128, 256>}, {pipeline_mode = #tpu.pipeline_mode<synchronous>, transform_indices = @transform_6, window_bounds = array<i64: 1, 256>}, {pipeline_mode = #tpu.pipeline_mode<synchronous>, transform_indices = @transform_7, window_bounds = array<i64: 256, 128>}, {pipeline_mode = #tpu.pipeline_mode<synchronous>, transform_indices = @transform_8, window_bounds = array<i64: 1, 128>}, {transform_indices = @transform_9, window_bounds = array<i64: 16, 2>}]} {
    %c0 = arith.constant 0 : index
    %c0_0 = arith.constant 0 : index
    %0 = vector.load %arg1[%c0, %c0_0] : memref<16x256xf32, #tpu.memory_space<vmem>>, vector<16x256xf32>
    %c0_1 = arith.constant 0 : index
    %c0_2 = arith.constant 0 : index
    %1 = vector.load %arg2[%c0_1, %c0_2] : memref<256x128xf32, #tpu.memory_space<vmem>>, vector<256x128xf32>
    %cst = arith.constant dense<0.000000e+00> : vector<16x128xf32>
    %2 = tpu.matmul %0, %1, %cst {dimension_numbers = #tpu.dot_dimension_numbers<[1], [0], [0], [1], [0, 0, 1, 1], [], []>} : vector<16x256xf32>, vector<256x128xf32>, vector<16x128xf32> -> vector<16x128xf32>
    %c0_3 = arith.constant 0 : index
    %c0_4 = arith.constant 0 : index
    %3 = vector.load %arg3[%c0_3, %c0_4] : memref<1x128xf32, #tpu.memory_space<vmem>>, vector<1x128xf32>
    %4 = vector.broadcast %3 : vector<1x128xf32> to vector<16x128xf32>
    %5 = arith.addf %2, %4 : vector<16x128xf32>
    %cst_5 = arith.constant 0.000000e+00 : f32
    %6 = vector.broadcast %cst_5 : f32 to vector<16x128xf32>
    %7 = arith.maximumf %5, %6 : vector<16x128xf32>
    %c0_6 = arith.constant 0 : index
    %c0_7 = arith.constant 0 : index
    %8 = vector.load %arg4[%c0_6, %c0_7] : memref<128x128xf32, #tpu.memory_space<vmem>>, vector<128x128xf32>
    %cst_8 = arith.constant dense<0.000000e+00> : vector<16x128xf32>
    %9 = tpu.matmul %7, %8, %cst_8 {dimension_numbers = #tpu.dot_dimension_numbers<[1], [0], [0], [1], [0, 0, 1, 1], [], []>} : vector<16x128xf32>, vector<128x128xf32>, vector<16x128xf32> -> vector<16x128xf32>
    %c0_9 = arith.constant 0 : index
    %c0_10 = arith.constant 0 : index
    %10 = vector.load %arg5[%c0_9, %c0_10] : memref<1x128xf32, #tpu.memory_space<vmem>>, vector<1x128xf32>
    %11 = vector.broadcast %10 : vector<1x128xf32> to vector<16x128xf32>
    %12 = arith.addf %9, %11 : vector<16x128xf32>
    %cst_11 = arith.constant 0.000000e+00 : f32
    %13 = vector.broadcast %cst_11 : f32 to vector<16x128xf32>
    %14 = arith.maximumf %12, %13 : vector<16x128xf32>
    %c0_12 = arith.constant 0 : index
    %c0_13 = arith.constant 0 : index
    %15 = vector.load %arg6[%c0_12, %c0_13] : memref<128x256xf32, #tpu.memory_space<vmem>>, vector<128x256xf32>
    %cst_14 = arith.constant dense<0.000000e+00> : vector<16x256xf32>
    %16 = tpu.matmul %14, %15, %cst_14 {dimension_numbers = #tpu.dot_dimension_numbers<[1], [0], [0], [1], [0, 0, 1, 1], [], []>} : vector<16x128xf32>, vector<128x256xf32>, vector<16x256xf32> -> vector<16x256xf32>
    %c0_15 = arith.constant 0 : index
    %c0_16 = arith.constant 0 : index
    %17 = vector.load %arg7[%c0_15, %c0_16] : memref<1x256xf32, #tpu.memory_space<vmem>>, vector<1x256xf32>
    %18 = vector.broadcast %17 : vector<1x256xf32> to vector<16x256xf32>
    %19 = arith.addf %16, %18 : vector<16x256xf32>
    %cst_17 = arith.constant 0.000000e+00 : f32
    %20 = vector.broadcast %cst_17 : f32 to vector<16x256xf32>
    %21 = arith.maximumf %19, %20 : vector<16x256xf32>
    %c0_18 = arith.constant 0 : index
    %c0_19 = arith.constant 0 : index
    %22 = vector.load %arg8[%c0_18, %c0_19] : memref<256x128xf32, #tpu.memory_space<vmem>>, vector<256x128xf32>
    %cst_20 = arith.constant dense<0.000000e+00> : vector<16x128xf32>
    %23 = tpu.matmul %21, %22, %cst_20 {dimension_numbers = #tpu.dot_dimension_numbers<[1], [0], [0], [1], [0, 0, 1, 1], [], []>} : vector<16x256xf32>, vector<256x128xf32>, vector<16x128xf32> -> vector<16x128xf32>
    %c0_21 = arith.constant 0 : index
    %c0_22 = arith.constant 0 : index
    %24 = vector.load %arg9[%c0_21, %c0_22] : memref<1x128xf32, #tpu.memory_space<vmem>>, vector<1x128xf32>
    %25 = vector.broadcast %24 : vector<1x128xf32> to vector<16x128xf32>
    %26 = arith.addf %23, %25 : vector<16x128xf32>
    %27 = vector.extract_strided_slice %26 {offsets = [0, 0], sizes = [16, 2], strides = [1, 1]} : vector<16x128xf32> to vector<16x2xf32>
    %c0_23 = arith.constant 0 : index
    %c0_24 = arith.constant 0 : index
    %28 = vector.load %arg10[%c0_23, %c0_24] : memref<16x2xf32, #tpu.memory_space<vmem>>, vector<16x2xf32>
    tpu.vector_store %arg10[%c0_23, %c0_24], %27 {strides = array<i32>} : memref<16x2xf32, #tpu.memory_space<vmem>>, vector<16x2xf32>,
    return
  }
  func.func @transform_0(%arg0: i32) -> (i32, i32) {
    %c0_i32 = arith.constant 0 : i32
    %c0_i32_0 = arith.constant 0 : i32
    return %arg0, %c0_i32 : i32, i32
  }
  func.func @transform_1(%arg0: i32) -> (i32, i32) {
    %c0_i32 = arith.constant 0 : i32
    %c0_i32_0 = arith.constant 0 : i32
    %c0_i32_1 = arith.constant 0 : i32
    return %c0_i32, %c0_i32_0 : i32, i32
  }
  func.func @transform_2(%arg0: i32) -> (i32, i32) {
    %c0_i32 = arith.constant 0 : i32
    %c0_i32_0 = arith.constant 0 : i32
    %c0_i32_1 = arith.constant 0 : i32
    return %c0_i32, %c0_i32_0 : i32, i32
  }
  func.func @transform_3(%arg0: i32) -> (i32, i32) {
    %c0_i32 = arith.constant 0 : i32
    %c0_i32_0 = arith.constant 0 : i32
    %c0_i32_1 = arith.constant 0 : i32
    return %c0_i32, %c0_i32_0 : i32, i32
  }
  func.func @transform_4(%arg0: i32) -> (i32, i32) {
    %c0_i32 = arith.constant 0 : i32
    %c0_i32_0 = arith.constant 0 : i32
    %c0_i32_1 = arith.constant 0 : i32
    return %c0_i32, %c0_i32_0 : i32, i32
  }
  func.func @transform_5(%arg0: i32) -> (i32, i32) {
    %c0_i32 = arith.constant 0 : i32
    %c0_i32_0 = arith.constant 0 : i32
    %c0_i32_1 = arith.constant 0 : i32
    return %c0_i32, %c0_i32_0 : i32, i32
  }
  func.func @transform_6(%arg0: i32) -> (i32, i32) {
    %c0_i32 = arith.constant 0 : i32
    %c0_i32_0 = arith.constant 0 : i32
    %c0_i32_1 = arith.constant 0 : i32
    return %c0_i32, %c0_i32_0 : i32, i32
  }
  func.func @transform_7(%arg0: i32) -> (i32, i32) {
    %c0_i32 = arith.constant 0 : i32
    %c0_i32_0 = arith.constant 0 : i32
    %c0_i32_1 = arith.constant 0 : i32
    return %c0_i32, %c0_i32_0 : i32, i32
  }
  func.func @transform_8(%arg0: i32) -> (i32, i32) {
    %c0_i32 = arith.constant 0 : i32
    %c0_i32_0 = arith.constant 0 : i32
    %c0_i32_1 = arith.constant 0 : i32
    return %c0_i32, %c0_i32_0 : i32, i32
  }
  func.func @transform_9(%arg0: i32) -> (i32, i32) {
    %c0_i32 = arith.constant 0 : i32
    %c0_i32_0 = arith.constant 0 : i32
    return %arg0, %c0_i32 : i32, i32
  }
}

</mosaic_0001>

<bundles_post_ra>
// kernel: share_encoder_pos_forward.1
= control target key start
LH: loop header
LB: loop body
LE: loop exit
PB: predicated region body
PF: predicated region fallthrough
CT: control target
= control target key end

     0   :  { %14 = vsyncpa [#allocation3], 0  ;;  %s1102_s0 = inlined_call_operand.hbm [shape: f32[16,256], index: 0, kind: input, shape index: {}]   ;;  %s1103_s1 = inlined_call_operand.hbm [shape: f32[256,128], index: 1, kind: input, shape index: {}]   ;;  %s1104_s2 = inlined_call_operand.vmem [shape: f32[1,128], index: 2, kind: input, shape index: {}]   ;;  %s1105_s3 = inlined_call_operand.hbm [shape: f32[128,128], index: 3, kind: input, shape index: {}]   ;;  %s1106_s4 = inlined_call_operand.vmem [shape: f32[1,128], index: 4, kind: input, shape index: {}]   ;;  %s1107_s5 = inlined_call_operand.hbm [shape: f32[128,256], index: 5, kind: input, shape index: {}]   ;;  %s1108_s6 = inlined_call_operand.vmem [shape: f32[1,256], index: 6, kind: input, shape index: {}]   ;;  %s1109_s7 = inlined_call_operand.hbm [shape: f32[256,128], index: 7, kind: input, shape index: {}]   ;;  %s1110_s8 = inlined_call_operand.vmem [shape: f32[1,128], index: 8, kind: input, shape index: {}]   ;;  %s1111_s9 = inlined_call_operand.vmem [shape: f32[16,2], index: 9, kind: output, shape index: {}]  }
   0x1   :  { %15 = vsyncpa [#allocation5], 0 }
   0x2   :  { %16 = vsyncpa [#allocation8], 0  ;;  %s955_s30 = smov [#allocation4]   ;;  %s839_s13 = scalar_lea.hbm %s1103_s1, 4096 }
   0x3   :  { %s34_s10 = sshll.u32 %s955_s30, 4  ;;  %p840_p0 = scmp.ne.s32.totalorder %s1103_s1, %s839_s13  ;;  %s35_s10 = int_to_ptr.vmem [resolvable:$true] %s34_s10 }
   0x4   :  { %p843_p1 = scmp.lt.u32.totalorder %s839_s13, %s1103_s1 }
   0x6   :  { %p845_p2 = pnand %p843_p1, %p840_p0 }
   0x8   :  { %848 = shalt.err (!%p845_p2)
}
   0x9   :  { %s849_s18 = scalar_lea.vmem %s35_s10, 4096  ;;  %p854_p4 = scmp.lt.s32.totalorder %s35_s10, %s35_s10 }
   0xa   :  { %p850_p3 = scmp.ne.s32.totalorder %s35_s10, %s849_s18  ;;  %p855_p5 = scmp.lt.s32.totalorder %s849_s18, %s849_s18 }
   0xc   :  { %p856_p6 = por %p855_p5, %p854_p4 }
   0xe   :  { %p857_p7 = pnand %p856_p6, %p850_p3 }
  0x10   :  { %860 = shalt.err (!%p857_p7)
}
  0x11   :  { %s956_s19 = smov 128   ;;  %s957_s20 = smov 8  }
  0x12   :  { %40 = dma.hbm_to_vmem [thread:$0]  %s1103_s1, 4096, %s35_s10, [#allocation5], %s956_s19, %s956_s19, %s957_s20  }
  0x13   :  { %s958_s23 = smov [#allocation7]   ;;  %s959_s25 = smov [#allocation2]  }
  0x14   :  { %s62_s24 = sshll.u32 %s958_s23, 4  ;;  %s22_s26 = sshll.u32 %s959_s25, 4  ;;  %s63_s24 = int_to_ptr.vmem [resolvable:$true] %s62_s24  ;;  %s23_s26 = int_to_ptr.vmem [resolvable:$true] %s22_s26 }
  0x15   :  { %s861_s29 = scalar_lea.hbm %s1107_s5, 4096 }
  0x16   :  { %p862_p8 = scmp.ne.s32.totalorder %s1107_s5, %s861_s29  ;;  %p865_p9 = scmp.lt.u32.totalorder %s861_s29, %s1107_s5 }
  0x18   :  { %p867_p10 = pnand %p865_p9, %p862_p8 }
  0x1a   :  { %870 = shalt.err (!%p867_p10)
}
  0x1b   :  { %s871_s1 = scalar_lea.vmem %s63_s24, 4096  ;;  %p876_p12 = scmp.lt.s32.totalorder %s63_s24, %s63_s24 }
  0x1c   :  { %p872_p11 = scmp.ne.s32.totalorder %s63_s24, %s871_s1  ;;  %p877_p13 = scmp.lt.s32.totalorder %s871_s1, %s871_s1 }
  0x1e   :  { %p878_p0 = por %p877_p13, %p876_p12 }
  0x20   :  { %p879_p1 = pnand %p878_p0, %p872_p11 }
  0x22   :  { %882 = shalt.err (!%p879_p1)
}
  0x23   :  { %s960_s10 = smov 256   ;;  %s961_s14 = smov 16  }
  0x24   :  { %68 = dma.hbm_to_vmem [thread:$0]  %s1107_s5, 4096, %s63_s24, [#allocation8], %s960_s10, %s960_s10, %s961_s14  }
  0x25   :  { %s883_s21 = scalar_lea.hbm %s1102_s0, 512 }
  0x26   :  { %p884_p2 = scmp.ne.s32.totalorder %s1102_s0, %s883_s21  ;;  %p887_p3 = scmp.lt.u32.totalorder %s883_s21, %s1102_s0 }
  0x28   :  { %p889_p4 = pnand %p887_p3, %p884_p2 }
  0x2a   :  { %892 = shalt.err (!%p889_p4)
}
  0x2b   :  { %s893_s28 = scalar_lea.vmem %s23_s26, 512  ;;  %p898_p6 = scmp.lt.s32.totalorder %s23_s26, %s23_s26 }
  0x2c   :  { %p894_p5 = scmp.ne.s32.totalorder %s23_s26, %s893_s28  ;;  %p899_p7 = scmp.lt.s32.totalorder %s893_s28, %s893_s28 }
  0x2e   :  { %p900_p8 = por %p899_p7, %p898_p6 }
  0x30   :  { %p901_p9 = pnand %p900_p8, %p894_p5 }
  0x32   :  { %904 = shalt.err (!%p901_p9)
}
  0x33   :  { %28 = dma.hbm_to_vmem [thread:$0]  %s1102_s0, 512, %s23_s26, [#allocation3], %s960_s10, %s960_s10, %s961_s14  }
  0x34   :  { %s962_s29 = smov [#allocation6]   ;;  %s963_s11 = smov [#allocation9]  }
  0x35   :  { %s48_s30 = sshll.u32 %s962_s29, 4  ;;  %s76_s12 = sshll.u32 %s963_s11, 4  ;;  %s49_s30 = int_to_ptr.vmem [resolvable:$true] %s48_s30  ;;  %s77_s12 = int_to_ptr.vmem [resolvable:$true] %s76_s12 }
  0x36   :  { %s905_s15 = scalar_lea.hbm %s1105_s3, 2048 }
  0x37   :  { %p906_p10 = scmp.ne.s32.totalorder %s1105_s3, %s905_s15  ;;  %p909_p11 = scmp.lt.u32.totalorder %s905_s15, %s1105_s3 }
  0x39   :  { %p911_p12 = pnand %p909_p11, %p906_p10 }
  0x3b   :  { %914 = shalt.err (!%p911_p12)
}
  0x3c   :  { %s915_s0 = scalar_lea.vmem %s49_s30, 2048  ;;  %p920_p0 = scmp.lt.s32.totalorder %s49_s30, %s49_s30 }
  0x3d   :  { %p916_p13 = scmp.ne.s32.totalorder %s49_s30, %s915_s0  ;;  %p921_p1 = scmp.lt.s32.totalorder %s915_s0, %s915_s0 }
  0x3f   :  { %p922_p2 = por %p921_p1, %p920_p0 }
  0x41   :  { %p923_p3 = pnand %p922_p2, %p916_p13 }
  0x43   :  { %926 = shalt.err (!%p923_p3)
}
  0x44   :  { %54 = dma.hbm_to_vmem [thread:$0]  %s1105_s3, 2048, %s49_s30, [#allocation5], %s956_s19, %s956_s19, %s957_s20  }
  0x45   :  { %s927_s23 = scalar_lea.hbm %s1109_s7, 4096 }
  0x46   :  { %p928_p4 = scmp.ne.s32.totalorder %s1109_s7, %s927_s23  ;;  %p931_p5 = scmp.lt.u32.totalorder %s927_s23, %s1109_s7 }
  0x48   :  { %p933_p6 = pnand %p931_p5, %p928_p4 }
  0x4a   :  { %936 = shalt.err (!%p933_p6)
}
  0x4b   :  { %s937_s24 = scalar_lea.vmem %s77_s12, 4096  ;;  %p942_p8 = scmp.lt.s32.totalorder %s77_s12, %s77_s12 }
  0x4c   :  { %p938_p7 = scmp.ne.s32.totalorder %s77_s12, %s937_s24  ;;  %p943_p9 = scmp.lt.s32.totalorder %s937_s24, %s937_s24 }
  0x4e   :  { %p944_p10 = por %p943_p9, %p942_p8 }
  0x50   :  { %p945_p11 = pnand %p944_p10, %p938_p7 }
  0x52   :  { %948 = shalt.err (!%p945_p11)
}
  0x53   :  { %82 = dma.hbm_to_vmem [thread:$0]  %s1109_s7, 4096, %s77_s12, [#allocation8], %s956_s19, %s956_s19, %s957_s20  }
  0x54   :  { %949 = dma.done.wait [#allocation3], 512  }
  0x55   :  { %950 = vsyncadd [#allocation3], 4294966784 }
  0x56   :  { %951 = dma.done.wait [#allocation5], 6144  }
  0x57   :  { %952 = vsyncadd [#allocation5], 4294961152 }
  0x58   :  { %953 = dma.done.wait [#allocation8], 8192  }
  0x59   :  { %954 = vsyncadd [#allocation8], 4294959104  ;;  %v120_v0 = vld [vmem:[#allocation4 + $0x80] sm:$0xff]  ;;  %v121_v1 = vld [vmem:[#allocation4 + $0x88] sm:$0xff]  ;;  %vm559_vm0 = vcmask 15360  }
  0x5a   :  { %v104_v2 = vld [vmem:[#allocation4] sm:$0xff]  ;;  %v701_v3 = vpack.c.bf16 %v121_v1, %v120_v0  ;;  %v105_v4 = vld [vmem:[#allocation4 + $0x8] sm:$0xff]  ;;  %v122_v5 = vld [vmem:[#allocation4 + $0x90] sm:$0xff] }
  0x5b   :  { %v123_v6 = vld [vmem:[#allocation4 + $0x98] sm:$0xff]  ;;  %v703_v7 = vpack.c.bf16 %v105_v4, %v104_v2  ;;  %v106_v9 = vld [vmem:[#allocation4 + $0x10] sm:$0xff]  ;;  %v124_v11 = vld [vmem:[#allocation4 + $0xa0] sm:$0xff] }
  0x5c   :  { %v705_v8 = vpack.c.bf16 %v123_v6, %v122_v5  ;;  %v107_v10 = vld [vmem:[#allocation4 + $0x18] sm:$0xff]  ;;  %702 = vmatprep.subr.bf16.mxu0 %v701_v3  ;;  %v125_v12 = vld [vmem:[#allocation4 + $0xa8] sm:$0xff]  ;;  %v108_v15 = vld [vmem:[#allocation4 + $0x20] sm:$0xff] }
  0x5d   :  { %704 = vmatpush3.bf16.msra.mxu0 %v703_v7  ;;  %v707_v13 = vpack.c.bf16 %v107_v10, %v106_v9  ;;  %v709_v14 = vpack.c.bf16 %v125_v12, %v124_v11  ;;  %v109_v16 = vld [vmem:[#allocation4 + $0x28] sm:$0xff]  ;;  %v126_v17 = vld [vmem:[#allocation4 + $0xb0] sm:$0xff]  ;;  %v127_v18 = vld [vmem:[#allocation4 + $0xb8] sm:$0xff] }
  0x5e   :  { %706 = vmatprep.subr.bf16.mxu0 %v705_v8  ;;  %v711_v19 = vpack.c.bf16 %v109_v16, %v108_v15  ;;  %v713_v20 = vpack.c.bf16 %v127_v18, %v126_v17  ;;  %v110_v21 = vld [vmem:[#allocation4 + $0x30] sm:$0xff]  ;;  %v111_v22 = vld [vmem:[#allocation4 + $0x38] sm:$0xff]  ;;  %v128_v23 = vld [vmem:[#allocation4 + $0xc0] sm:$0xff] }
  0x5f   :  { %v129_v24 = vld [vmem:[#allocation4 + $0xc8] sm:$0xff]  ;;  %v112_v26 = vld [vmem:[#allocation4 + $0x40] sm:$0xff]  ;;  %v715_v27 = vpack.c.bf16 %v111_v22, %v110_v21  ;;  %v222_v30 = vld [vmem:[#allocation6 + $0x10] sm:$0xff] }
  0x60   :  { %v101_v25 = vld [vmem:[#allocation2 + $0x8] sm:$0xff]  ;;  %v220_v28 = vld [vmem:[#allocation6] sm:$0xff]  ;;  %v717_v31 = vpack.c.bf16 %v129_v24, %v128_v23  ;;  %v130_v33 = vld [vmem:[#allocation4 + $0xd0] sm:$0xff] }
  0x61   :  { %708 = vmatpush3.bf16.msra.mxu0 %v707_v13  ;;  %207 = vmatprep.mubr.f32.mxu0 %v101_v25  ;;  %v221_v29 = vld [vmem:[#allocation6 + $0x8] sm:$0xff]  ;;  %v223_v35 = vld [vmem:[#allocation6 + $0x18] sm:$0xff]  ;;  %v224_v38 = vld [vmem:[#allocation6 + $0x20] sm:$0xff] }
  0x62   :  { %710 = vmatprep.subr.bf16.mxu0 %v709_v14  ;;  %v113_v32 = vld [vmem:[#allocation4 + $0x48] sm:$0xff]  ;;  %v733_v34 = vpack.c.bf16 %v221_v29, %v220_v28  ;;  %v131_v36 = vld [vmem:[#allocation4 + $0xd8] sm:$0xff]  ;;  %v737_v37 = vpack.c.bf16 %v223_v35, %v222_v30  ;;  %v114_v42 = vld [vmem:[#allocation4 + $0x50] sm:$0xff] }
  0x63   :  { %v225_v39 = vld [vmem:[#allocation6 + $0x28] sm:$0xff]  ;;  %v719_v40 = vpack.c.bf16 %v113_v32, %v112_v26  ;;  %v721_v41 = vpack.c.bf16 %v131_v36, %v130_v33  ;;  %v115_v43 = vld [vmem:[#allocation4 + $0x58] sm:$0xff]  ;;  %v132_v44 = vld [vmem:[#allocation4 + $0xe0] sm:$0xff] }
  0x64   :  { %734 = vmatprep.subr.bf16.mxu1 %v733_v34  ;;  %v741_v45 = vpack.c.bf16 %v225_v39, %v224_v38  ;;  %v133_v46 = vld [vmem:[#allocation4 + $0xe8] sm:$0xff]  ;;  %v226_v47 = vld [vmem:[#allocation6 + $0x30] sm:$0xff]  ;;  %v227_v48 = vld [vmem:[#allocation6 + $0x38] sm:$0xff]  ;;  %v723_v49 = vpack.c.bf16 %v115_v43, %v114_v42 }
  0x65   :  { %712 = vmatpush3.bf16.msra.mxu0 %v711_v19  ;;  %736 = vmatpush3.bf16.msra.mxu1 %v733_v34  ;;  %v725_v50 = vpack.c.bf16 %v133_v46, %v132_v44  ;;  %v116_v51 = vld [vmem:[#allocation4 + $0x60] sm:$0xff]  ;;  %v117_v52 = vld [vmem:[#allocation4 + $0x68] sm:$0xff]  ;;  %v134_v53 = vld [vmem:[#allocation4 + $0xf0] sm:$0xff]  ;;  %v745_v54 = vpack.c.bf16 %v227_v48, %v226_v47 }
  0x66   :  { %714 = vmatprep.subr.bf16.mxu0 %v713_v20  ;;  %738 = vmatprep.subr.bf16.mxu1 %v737_v37  ;;  %v135_v55 = vld [vmem:[#allocation4 + $0xf8] sm:$0xff]  ;;  %v228_v56 = vld [vmem:[#allocation6 + $0x40] sm:$0xff]  ;;  %v229_v57 = vld [vmem:[#allocation6 + $0x48] sm:$0xff]  ;;  %v727_v58 = vpack.c.bf16 %v117_v52, %v116_v51 }
  0x67   :  { %v729_v59 = vpack.c.bf16 %v135_v55, %v134_v53  ;;  %v118_v60 = vld [vmem:[#allocation4 + $0x70] sm:$0xff]  ;;  %v119_v61 = vld [vmem:[#allocation4 + $0x78] sm:$0xff]  ;;  %v749_v62 = vpack.c.bf16 %v229_v57, %v228_v56  ;;  %v100_v0 = vld [vmem:[#allocation2] sm:$0xff] }
  0x68   :  { %v731_v63 = vpack.c.bf16 %v119_v61, %v118_v60  ;;  %v103_v1 = vld [vmem:[#allocation2 + $0x18] sm:$0xff]  ;;  %v102_v2 = vld [vmem:[#allocation2 + $0x10] sm:$0xff]  ;;  %v232_v6 = vld [vmem:[#allocation6 + $0x60] sm:$0xff] }
  0x69   :  { %716 = vmatpush3.bf16.msra.mxu0 %v715_v27  ;;  %740 = vmatpush3.bf16.msra.mxu1 %v737_v37  ;;  %v230_v3 = vld [vmem:[#allocation6 + $0x50] sm:$0xff]  ;;  %v231_v4 = vld [vmem:[#allocation6 + $0x58] sm:$0xff]  ;;  %v233_v7 = vld [vmem:[#allocation6 + $0x68] sm:$0xff] }
  0x6a   :  { %718 = vmatprep.subr.bf16.mxu0 %v717_v31  ;;  %742 = vmatprep.subr.bf16.mxu1 %v741_v45  ;;  %v753_v5 = vpack.c.bf16 %v231_v4, %v230_v3  ;;  %v757_v8 = vpack.c.bf16 %v233_v7, %v232_v6  ;;  %v234_v9 = vld [vmem:[#allocation6 + $0x70] sm:$0xff]  ;;  %v235_v10 = vld [vmem:[#allocation6 + $0x78] sm:$0xff]  ;;  %v321_v12 = vld [vmem:[#allocation7 + $0x8] sm:$0xff]  ;;  %v964_v7 = vmov 0.0  }
  0x6b   :  { %v761_v11 = vpack.c.bf16 %v235_v10, %v234_v9  ;;  %v323_v13 = vld [vmem:[#allocation7 + $0x18] sm:$0xff]  ;;  %v320_v14 = vld [vmem:[#allocation7] sm:$0xff]  ;;  %v322_v16 = vld [vmem:[#allocation7 + $0x10] sm:$0xff] }
  0x6c   :  { %v765_v15 = vpack.c.bf16 %v323_v13, %v321_v12  ;;  %v325_v17 = vld [vmem:[#allocation7 + $0x28] sm:$0xff]  ;;  %v327_v18 = vld [vmem:[#allocation7 + $0x38] sm:$0xff]  ;;  %v767_v19 = vpack.c.bf16 %v322_v16, %v320_v14  ;;  %v324_v21 = vld [vmem:[#allocation7 + $0x20] sm:$0xff] }
  0x6d   :  { %720 = vmatpush3.bf16.msra.mxu0 %v719_v40  ;;  %744 = vmatpush3.bf16.msra.mxu1 %v741_v45  ;;  %v769_v20 = vpack.c.bf16 %v327_v18, %v325_v17  ;;  %v326_v22 = vld [vmem:[#allocation7 + $0x30] sm:$0xff]  ;;  %v329_v23 = vld [vmem:[#allocation7 + $0x48] sm:$0xff]  ;;  %v331_v24 = vld [vmem:[#allocation7 + $0x58] sm:$0xff] }
  0x6e   :  { %722 = vmatprep.subr.bf16.mxu0 %v721_v41  ;;  %746 = vmatprep.subr.bf16.mxu1 %v745_v54  ;;  %v771_v25 = vpack.c.bf16 %v326_v22, %v324_v21  ;;  %v773_v26 = vpack.c.bf16 %v331_v24, %v329_v23  ;;  %v328_v27 = vld [vmem:[#allocation7 + $0x40] sm:$0xff]  ;;  %v330_v28 = vld [vmem:[#allocation7 + $0x50] sm:$0xff]  ;;  %v333_v29 = vld [vmem:[#allocation7 + $0x68] sm:$0xff] }
  0x6f   :  { %v335_v30 = vld [vmem:[#allocation7 + $0x78] sm:$0xff]  ;;  %v775_v31 = vpack.c.bf16 %v330_v28, %v328_v27  ;;  %v332_v33 = vld [vmem:[#allocation7 + $0x60] sm:$0xff]  ;;  %v334_v34 = vld [vmem:[#allocation7 + $0x70] sm:$0xff] }
  0x70   :  { %v777_v32 = vpack.c.bf16 %v335_v30, %v333_v29  ;;  %v337_v35 = vld [vmem:[#allocation7 + $0x88] sm:$0xff]  ;;  %v339_v36 = vld [vmem:[#allocation7 + $0x98] sm:$0xff]  ;;  %v779_v37 = vpack.c.bf16 %v334_v34, %v332_v33  ;;  %v336_v39 = vld [vmem:[#allocation7 + $0x80] sm:$0xff] }
  0x71   :  { %724 = vmatpush3.bf16.msra.mxu0 %v723_v49  ;;  %748 = vmatpush3.bf16.msra.mxu1 %v745_v54  ;;  %v781_v38 = vpack.c.bf16 %v339_v36, %v337_v35  ;;  %v338_v40 = vld [vmem:[#allocation7 + $0x90] sm:$0xff]  ;;  %v341_v41 = vld [vmem:[#allocation7 + $0xa8] sm:$0xff]  ;;  %v343_v42 = vld [vmem:[#allocation7 + $0xb8] sm:$0xff] }
  0x72   :  { %726 = vmatprep.subr.bf16.mxu0 %v725_v50  ;;  %750 = vmatprep.subr.bf16.mxu1 %v749_v62  ;;  %v783_v43 = vpack.c.bf16 %v338_v40, %v336_v39  ;;  %v785_v44 = vpack.c.bf16 %v343_v42, %v341_v41  ;;  %v340_v45 = vld [vmem:[#allocation7 + $0xa0] sm:$0xff]  ;;  %v342_v46 = vld [vmem:[#allocation7 + $0xb0] sm:$0xff]  ;;  %v345_v47 = vld [vmem:[#allocation7 + $0xc8] sm:$0xff] }
  0x73   :  { %v347_v48 = vld [vmem:[#allocation7 + $0xd8] sm:$0xff]  ;;  %v787_v49 = vpack.c.bf16 %v342_v46, %v340_v45  ;;  %v344_v51 = vld [vmem:[#allocation7 + $0xc0] sm:$0xff]  ;;  %v346_v52 = vld [vmem:[#allocation7 + $0xd0] sm:$0xff] }
  0x74   :  { %v789_v50 = vpack.c.bf16 %v347_v48, %v345_v47  ;;  %v791_v53 = vpack.c.bf16 %v346_v52, %v344_v51  ;;  %v569_v56 = vld [vmem:[%s1104_s2] ss:$0 sm:$0xff]  ;;  %v348_v4 = vld [vmem:[#allocation7 + $0xe0] sm:$0xff]  ;;  %v462_v9 = vld [vmem:[#allocation9 + $0x88] sm:$0xff] }
  0x75   :  { %728 = vmatpush3.bf16.msra.mxu0 %v727_v58  ;;  %752 = vmatpush3.bf16.msra.mxu1 %v749_v62  ;;  %v445_v10 = vld [vmem:[#allocation9] sm:$0xff]  ;;  %v446_v12 = vld [vmem:[#allocation9 + $0x8] sm:$0xff]  ;;  %v463_v13 = vld [vmem:[#allocation9 + $0x90] sm:$0xff] }
  0x76   :  { %730 = vmatprep.subr.bf16.mxu0 %v729_v59  ;;  %754 = vmatprep.subr.bf16.mxu1 %v753_v5  ;;  %v464_v14 = vld [vmem:[#allocation9 + $0x98] sm:$0xff]  ;;  %v447_v17 = vld [vmem:[#allocation9 + $0x10] sm:$0xff]  ;;  %v449_v23 = vld [vmem:[#allocation9 + $0x20] sm:$0xff] }
  0x77   :  { %v801_v16 = vpack.c.bf16 %v464_v14, %v463_v13  ;;  %v448_v18 = vld [vmem:[#allocation9 + $0x18] sm:$0xff]  ;;  %v450_v24 = vld [vmem:[#allocation9 + $0x28] sm:$0xff]  ;;  %v451_v29 = vld [vmem:[#allocation9 + $0x30] sm:$0xff] }
  0x78   :  { %v803_v21 = vpack.c.bf16 %v448_v18, %v447_v17  ;;  %v807_v27 = vpack.c.bf16 %v450_v24, %v449_v23  ;;  %v452_v30 = vld [vmem:[#allocation9 + $0x38] sm:$0xff]  ;;  %v453_v35 = vld [vmem:[#allocation9 + $0x40] sm:$0xff]  ;;  %v454_v36 = vld [vmem:[#allocation9 + $0x48] sm:$0xff] }
  0x79   :  { %732 = vmatpush3.bf16.msra.mxu0 %v731_v63  ;;  %756 = vmatpush3.bf16.msra.mxu1 %v753_v5  ;;  %v350_v5 = vld [vmem:[#allocation7 + $0xf0] sm:$0xff]  ;;  %v811_v33 = vpack.c.bf16 %v452_v30, %v451_v29  ;;  %v815_v39 = vpack.c.bf16 %v454_v36, %v453_v35  ;;  %v456_v42 = vld [vmem:[#allocation9 + $0x58] sm:$0xff] }
  0x7a   :  { %758 = vmatprep.subr.bf16.mxu1 %v757_v8  ;;  %766 = vmatprep.subr.bf16.mxu0 %v765_v15  ;;  %v795_v6 = vpack.c.bf16 %v350_v5, %v348_v4  ;;  %v799_v15 = vpack.c.bf16 %v446_v12, %v445_v10  ;;  %v455_v41 = vld [vmem:[#allocation9 + $0x50] sm:$0xff] }
  0x7b   :  { %v819_v45 = vpack.c.bf16 %v456_v42, %v455_v41  ;;  %v570_v47 = vld [vmem:[%s1106_s4] ss:$0 sm:$0xff] }
  0x7c   :  { %208 = vmatmul.mubr.f32.vlgmr.msra.gmra.mrb[0].mxu0 %v100_v0 }
  0x7d   :  { %212 = vmatprep.mubr.f32.mxu0 %v103_v1  ;;  %760 = vmatpush3.bf16.msra.mxu1 %v757_v8  ;;  %v349_v1 = vld [vmem:[#allocation7 + $0xe8] sm:$0xff]  ;;  %v461_v8 = vld [vmem:[#allocation9 + $0x80] sm:$0xff] }
  0x7e   :  { %762 = vmatprep.subr.bf16.mxu1 %v761_v11  ;;  %768 = vmatpush1.bf16.msra.mxu0 %v767_v19  ;;  %v465_v19 = vld [vmem:[#allocation9 + $0xa0] sm:$0xff] }
  0x7f   :  { %770 = vmatprep.subr.bf16.mxu0 %v769_v20  ;;  %v466_v20 = vld [vmem:[#allocation9 + $0xa8] sm:$0xff] }
  0x80   :  { %213 = vmatmul.mubr.f32.gmra.mrb[2].mxu0 %v102_v2  ;;  %v351_v2 = vld [vmem:[#allocation7 + $0xf8] sm:$0xff]  ;;  %v805_v22 = vpack.c.bf16 %v466_v20, %v465_v19  ;;  %v571_v19 = vld [vmem:[%s1110_s8] ss:$0 sm:$0xff] }
  0x81   :  { %764 = vmatpush3.bf16.msra.mxu1 %v761_v11  ;;  %v793_v3 = vpack.c.bf16 %v351_v2, %v349_v1  ;;  %428 = vmatprep.mubr.f32.mxu0 %v964_v7  ;;  %v797_v11 = vpack.c.bf16 %v462_v9, %v461_v8  ;;  %v352_v2 = vld [vmem:[%s1108_s6] sm:$0x3] }
  0x82   :  { %772 = vmatpush1.bf16.msra.mxu0 %v771_v25  ;;  %v467_v25 = vld [vmem:[#allocation9 + $0xb0] sm:$0xff] }
  0x83   :  { %774 = vmatprep.subr.bf16.mxu0 %v773_v26  ;;  %798 = vmatprep.subr.bf16.mxu1 %v797_v11  ;;  %v468_v26 = vld [vmem:[#allocation9 + $0xb8] sm:$0xff] }
  0x84   :  { %v809_v28 = vpack.c.bf16 %v468_v26, %v467_v25 }
  0x86   :  { %776 = vmatpush1.bf16.msra.mxu0 %v775_v31  ;;  %v469_v31 = vld [vmem:[#allocation9 + $0xc0] sm:$0xff] }
  0x87   :  { %778 = vmatprep.subr.bf16.mxu0 %v777_v32  ;;  %v470_v32 = vld [vmem:[#allocation9 + $0xc8] sm:$0xff] }
  0x88   :  { %v813_v34 = vpack.c.bf16 %v470_v32, %v469_v31 }
  0x8a   :  { %780 = vmatpush1.bf16.msra.mxu0 %v779_v37  ;;  %v471_v37 = vld [vmem:[#allocation9 + $0xd0] sm:$0xff] }
  0x8b   :  { %782 = vmatprep.subr.bf16.mxu0 %v781_v38  ;;  %v472_v38 = vld [vmem:[#allocation9 + $0xd8] sm:$0xff] }
  0x8c   :  { %v817_v40 = vpack.c.bf16 %v472_v38, %v471_v37 }
  0x8e   :  { %784 = vmatpush1.bf16.msra.mxu0 %v783_v43  ;;  %v473_v43 = vld [vmem:[#allocation9 + $0xe0] sm:$0xff] }
  0x8f   :  { %786 = vmatprep.subr.bf16.mxu0 %v785_v44  ;;  %v474_v44 = vld [vmem:[#allocation9 + $0xe8] sm:$0xff] }
  0x90   :  { %v821_v46 = vpack.c.bf16 %v474_v44, %v473_v43 }
  0x92   :  { %788 = vmatpush1.bf16.msra.mxu0 %v787_v49 }
  0x93   :  { %790 = vmatprep.subr.bf16.mxu0 %v789_v50 }
  0x96   :  { %792 = vmatpush1.bf16.msra.mxu0 %v791_v53 }
  0x97   :  { %794 = vmatprep.subr.bf16.mxu0 %v793_v3 }
  0x9a   :  { %796 = vmatpush1.bf16.msra.mxu0 %v795_v6 }
 0x14f   :  { %v604_v54 = vpop.f32.mrb[0].mxu0 }
 0x150   :  { %v605_v55 = vpop.f32.mrb[1].mxu0 }
 0x151   :  { %v606_v57 = vadd.f32 %v605_v55, %v604_v54  ;;  %v457_v54 = vld [vmem:[#allocation9 + $0x60] sm:$0xff]  ;;  %v458_v55 = vld [vmem:[#allocation9 + $0x68] sm:$0xff] }
 0x153   :  { %v607_v58 = vpop.f32.mrb[2].mxu0  ;;  %v210_v59 = vadd.f32 %v606_v57, %v569_v56  ;;  %v475_v57 = vld [vmem:[#allocation9 + $0xf0] sm:$0xff] }
 0x154   :  { %v608_v60 = vpop.f32.mrb[3].mxu0 }
 0x155   :  { %v609_v61 = vadd.f32 %v608_v60, %v607_v58  ;;  %v218_v62 = vmax.f32 %v210_v59, 0.0  ;;  %v476_v58 = vld [vmem:[#allocation9 + $0xf8] sm:$0xff]  ;;  %v459_v60 = vld [vmem:[#allocation9 + $0x70] sm:$0xff] }
 0x156   :  { %v825_v59 = vpack.c.bf16 %v476_v58, %v475_v57 }
 0x157   :  { %v215_v63 = vadd.f32 %v609_v61, %v569_v56  ;;  %698 = vmatprep.mubr.f32.mxu1 %v218_v62  ;;  %v823_v56 = vpack.c.bf16 %v458_v55, %v457_v54  ;;  %v460_v61 = vld [vmem:[#allocation9 + $0x78] sm:$0xff] }
 0x158   :  { %v827_v62 = vpack.c.bf16 %v460_v61, %v459_v60 }
 0x159   :  { %v219_v0 = vmax.f32 %v215_v63, 0.0  ;;  %v354_v63 = vlaneseq }
 0x15b   :  { %699 = vmatmul.mubr.f32.vlgmr.msra.gmra.mrb[0].mxu1 %v219_v0  ;;  %v355_v0 = vshrl.u32 %v354_v63, 7 }
 0x15c   :  { %800 = vmatpush3.bf16.msra.mxu1 %v799_v15 }
 0x15d   :  { %802 = vmatprep.subr.bf16.mxu1 %v801_v16  ;;  %v356_v1 = vsub.s32 0, %v355_v0  ;;  %v360_v3 = vsub.s32 1, %v355_v0 }
 0x15f   :  { %v357_v4 = vrot.slane %v352_v2, %v356_v1  ;;  %v361_v5 = vrot.slane %v352_v2, %v360_v3 }
 0x160   :  { %804 = vmatpush3.bf16.msra.mxu1 %v803_v21 }
 0x161   :  { %806 = vmatprep.subr.bf16.mxu1 %v805_v22 }
 0x164   :  { %808 = vmatpush3.bf16.msra.mxu1 %v807_v27 }
 0x165   :  { %810 = vmatprep.subr.bf16.mxu1 %v809_v28 }
 0x168   :  { %812 = vmatpush3.bf16.msra.mxu1 %v811_v33 }
 0x169   :  { %814 = vmatprep.subr.bf16.mxu1 %v813_v34 }
 0x16c   :  { %816 = vmatpush3.bf16.msra.mxu1 %v815_v39 }
 0x16d   :  { %818 = vmatprep.subr.bf16.mxu1 %v817_v40 }
 0x170   :  { %820 = vmatpush3.bf16.msra.mxu1 %v819_v45 }
 0x171   :  { %822 = vmatprep.subr.bf16.mxu1 %v821_v46 }
 0x174   :  { %824 = vmatpush3.bf16.msra.mxu1 %v823_v56 }
 0x175   :  { %826 = vmatprep.subr.bf16.mxu1 %v825_v59 }
 0x178   :  { %828 = vmatpush3.bf16.msra.mxu1 %v827_v62 }
 0x22e   :  { %v700_v48 = vpop.f32.mrb[0].mxu1 }
 0x22f   :  { %v309_v49 = vpop.f32.mrb[1].mxu1  ;;  %v315_v51 = vadd.f32 %v700_v48, %v570_v47 }
 0x230   :  { %v310_v50 = vadd.f32 %v570_v47, %v309_v49 }
 0x231   :  { %v319_v53 = vmax.f32 %v315_v51, 0.0 }
 0x232   :  { %v318_v52 = vmax.f32 %v310_v50, 0.0 }
 0x234   :  { %429 = vmatmul.mubr.f32.vlgmr.msra.gmra.mrb[4].mxu0 %v318_v52 }
 0x235   :  { %434 = vmatprep.mubr.f32.mxu0 %v964_v7 }
 0x238   :  { %435 = vmatmul.mubr.f32.gmra.mrb[6].mxu0 %v319_v53 }
 0x307   :  { %v430_v6 = vpop.f32.mrb[4].mxu0 }
 0x308   :  { %v431_v7 = vadd.f32 %v430_v6, %v357_v4  ;;  %v432_v8 = vpop.f32.mrb[5].mxu0 }
 0x309   :  { %v433_v9 = vadd.f32 %v432_v8, %v361_v5 }
 0x30a   :  { %v441_v12 = vmax.f32 %v431_v7, 0.0 }
 0x30b   :  { %v442_v10 = vmax.f32 %v433_v9, 0.0  ;;  %v436_v11 = vpop.f32.mrb[6].mxu0 }
 0x30c   :  { %v437_v13 = vadd.f32 %v436_v11, %v357_v4  ;;  %v438_v14 = vpop.f32.mrb[7].mxu0 }
 0x30d   :  { %v439_v15 = vadd.f32 %v438_v14, %v361_v5  ;;  %548 = vmatprep.mubr.f32.mxu1 %v442_v10 }
 0x30e   :  { %549 = vmatmul.mubr.f32.vlgmr.msra.gmra.mrb[2].mxu1 %v441_v12  ;;  %v443_v17 = vmax.f32 %v437_v13, 0.0 }
 0x30f   :  { %v444_v16 = vmax.f32 %v439_v15, 0.0 }
 0x311   :  { %553 = vmatprep.mubr.f32.mxu1 %v444_v16 }
 0x312   :  { %554 = vmatmul.mubr.f32.gmra.mrb[4].mxu1 %v443_v17 }
 0x3e1   :  { %v660_v18 = vpop.f32.mrb[2].mxu1 }
 0x3e2   :  { %v661_v20 = vpop.f32.mrb[3].mxu1 }
 0x3e3   :  { %v662_v21 = vadd.f32 %v661_v20, %v660_v18 }
 0x3e5   :  { %v551_v22 = vadd.f32 %v662_v21, %v571_v19  ;;  %v663_v23 = vpop.f32.mrb[4].mxu1 }
 0x3e6   :  { %v664_v24 = vpop.f32.mrb[5].mxu1 }
 0x3e7   :  { %560 = vst.msk [vmem:[%s1111_s9] sm:$0xff] %vm559_vm0, %v551_v22  ;;  %v665_v25 = vadd.f32 %v664_v24, %v663_v23 }
 0x3e9   :  { %v556_v26 = vadd.f32 %v665_v25, %v571_v19 }
 0x3eb   :  { %561 = vst.msk [vmem:[%s1111_s9 + $0x8] sm:$0xff] %vm559_vm0, %v556_v26 }
 0x3ec   :  { %566 = vsyncpa [#allocation3], 1 }
 0x3ed   :  { %567 = vsyncpa [#allocation5], 1 }
 0x3ee   :  { %568 = vsyncpa [#allocation8], 1 }

</bundles_post_ra>
